<compile_context>
chip_gen: v6e
topology: v6e:2x2x1
jax: 0.10.0
libtpu: 0.0.40
codegen_flags: <defaults>
</compile_context>

<pallas_src>
import functools

import jax
import jax.numpy as jnp
from jax.experimental import pallas as pl
from jax.experimental.pallas import tpu as pltpu


def attention_kernel(x_ref, w1_ref, bw_ref, b2_ref, o_ref, *, sen_len, pack):
    # x_ref:  (TB*S, D)  flattened tile of token rows (S consecutive rows = 1 sentence)
    # w1_ref: (D, D)     linear1 weight, pre-transposed to (in, out)
    # bw_ref: (2, D)     row 0 = linear1 bias, row 1 = linear2 weight row
    # b2_ref: (1,)       linear2 bias (SMEM scalar)
    # o_ref:  (TB//pack, pack*D)  lane-dense packed output block
    S = sen_len
    TBS, D = x_ref.shape
    TB = TBS // S

    x = x_ref[...]                                     # keep input dtype for the MXU matmul
    b1 = bw_ref[0:1, :].astype(jnp.float32)            # (1, D)
    w2 = bw_ref[1:2, :].astype(jnp.float32)            # (1, D)

    # linear1 + tanh: one well-shaped MXU matmul (M = TB*S), f32 accumulation,
    # tanh on the EUP.
    u = jnp.tanh(
        jnp.dot(x, w1_ref[...], preferred_element_type=jnp.float32) + b1
    )                                                  # (TB*S, D) f32

    # linear2 -> one logit per token.  N=1 matmul is badly shaped for the MXU;
    # VPU multiply + lane (XLU) reduce is free filler in this mem-bound kernel.
    logits = jnp.sum(u * w2, axis=-1) + b2_ref[0]
    logits = logits.reshape(TB, S)                     # tiny relayout (TB*S scalars)

    # softmax over sen_len (f32, max-subtracted).  Approx reciprocal runs on the
    # otherwise-idle EUP slot; one Newton step restores full f32 accuracy.
    m = jnp.max(logits, axis=-1, keepdims=True)
    e = jnp.exp(logits - m)
    denom = jnp.sum(e, axis=-1, keepdims=True)
    inv = pl.reciprocal(denom, approx=True)
    inv = inv * (2.0 - denom * inv)
    alpha = e * inv                                    # (TB, S)

    # Weighted sum over sen_len, accumulated in f32 (VPU; slack in mem-bound regime).
    x3 = x.reshape(TB, S, D).astype(jnp.float32)
    out = jnp.sum(alpha[:, :, None] * x3, axis=1)      # (TB, D) f32

    if pack == 1:
        o_ref[...] = out.astype(o_ref.dtype)
    else:
        # Lane-dense packing: concatenate the `pack` contiguous sublane halves
        # of the tile along lanes (RoPE-style concat; no strided relayout).
        tb_sub = TB // pack
        halves = [out[h * tb_sub:(h + 1) * tb_sub, :] for h in range(pack)]
        o_ref[...] = jnp.concatenate(halves, axis=-1).astype(o_ref.dtype)


def _cdiv(a, b):
    return (a + b - 1) // b


def _round_up(n, m):
    return _cdiv(n, m) * m


def _default_vmem_limit_bytes():
    """Per-generation scoped-VMEM limit: ~11/16 of physical per-core VMEM
    (~44 MiB on v7x's 64 MiB/TC, ~88 MiB on v5e/v6e's 128 MiB).  Falls back to
    the v7x-safe value if the TPU info query is unavailable."""
    cap = 64 * 1024 * 1024
    try:
        cap = int(pltpu.get_tpu_info().vmem_capacity_bytes)
    except Exception:
        pass
    return max(32 * 1024 * 1024, (cap * 11) // 16)


def _choose_tiling(B, S, D, itemsize, tile_budget_bytes, row_align):
    """Pick (n_steps, tb).  Steps are chosen first so padding stays small
    (< n_steps * row_align rows), steps are kept even (balanced v7x cores) and
    >= 4 for large B (>= 2 pipelined steps per TensorCore) as long as tiles
    stay >= 512 rows (the ~85%-of-roofline knee)."""
    # Per-batch-row VMEM: double-buffered x tile + ~5 f32 intermediates of
    # x-tile size (f32 x copy, pre-tanh dot result / u, u*w2 product, alpha*x
    # product, slack) + double-buffered output rows.
    bytes_per_row = 2 * S * D * itemsize + 5 * S * D * 4 + 2 * D * 4
    tb_max = (tile_budget_bytes // bytes_per_row) // row_align * row_align
    tb_max = max(row_align, min(tb_max, 4096))

    n = _cdiv(B, tb_max)
    for target in (8, 4, 2):
        if n < target and _cdiv(B, target) >= 512:
            n = target
            break
    if n > 1 and n % 2:
        n += 1                                    # balanced work for 2 v7x cores
    tb = _round_up(_cdiv(B, n), row_align)
    return n, tb


def attention_pallas(x, w1_t, b1, w2_row, b2, *, tb=None, vmem_limit_bytes=None):
    """x: [B, S, D]; w1_t: [D, D] (= W1_pt.T); b1: [1, D]; w2_row: [1, D]; b2: [1]."""
    B, S, D = x.shape
    if vmem_limit_bytes is None:
        vmem_limit_bytes = _default_vmem_limit_bytes()

    # Output lane-packing factor: pack `pack` batch rows per 128-lane output row.
    if D < 128 and 128 % D == 0:
        pack = 128 // D
    else:
        pack = 1
    row_align = 8 * pack

    if tb is None:
        n_steps, tb = _choose_tiling(B, S, D, x.dtype.itemsize,
                                     (vmem_limit_bytes * 7) // 10, row_align)
    else:
        tb = max(row_align, _round_up(tb, row_align))
        n_steps = _cdiv(B, tb)
    b_pad = n_steps * tb

    if b_pad != B:
        x = jnp.pad(x, ((0, b_pad - B), (0, 0), (0, 0)))

    # Flatten [B, S, D] -> [B*S, D] outside the kernel (free layout plumbing);
    # the MXU matmul inside then needs no in-kernel reshape of the big tile.
    x_flat = x.reshape(b_pad * S, D)
    # Fold linear1 bias + linear2 weight row into one constant (2, D) input.
    bw = jnp.concatenate([b1.reshape(1, D), w2_row.reshape(1, D)], axis=0)

    out_flat = pl.pallas_call(
        functools.partial(attention_kernel, sen_len=S, pack=pack),
        out_shape=jax.ShapeDtypeStruct((b_pad // pack, pack * D), x.dtype),
        grid_spec=pltpu.PrefetchScalarGridSpec(
            num_scalar_prefetch=0,
            grid=(n_steps,),
            in_specs=[
                pl.BlockSpec((tb * S, D), lambda i: (i, 0)),
                # Constant-index blocks: Pallas skips the re-DMA across steps.
                # (For large D add pipeline_mode=pl.Buffered(1) to drop the
                # dead second buffer; negligible at D=64.)
                pl.BlockSpec((D, D), lambda i: (0, 0)),
                pl.BlockSpec((2, D), lambda i: (0, 0)),
                pl.BlockSpec(memory_space=pltpu.MemorySpace.SMEM),  # b2 scalar
            ],
            out_specs=pl.BlockSpec((tb // pack, pack * D), lambda i: (i, 0)),
        ),
        compiler_params=pltpu.CompilerParams(
            dimension_semantics=("parallel",),
            vmem_limit_bytes=vmem_limit_bytes,
        ),
    )(x_flat, w1_t, bw, b2)

    if pack == 1:
        out = out_flat
    else:
        # Un-pack the lane-dense output: block i, row k, lane-chunk h holds
        # batch row i*tb + h*(tb//pack) + k.  Cheap XLA layout op on B*D*4 bytes.
        out = out_flat.reshape(n_steps, tb // pack, pack, D)
        out = jnp.transpose(out, (0, 2, 1, 3)).reshape(b_pad, D)
    return out[:B]


def attention_forward(x, w1_t, b1, w2_row, b2, *, min_pallas_bytes=1 << 20, **kw):
    """Dispatcher: below ~1 MiB the fixed pallas_call/DMA overhead dominates,
    so use the plain XLA path; otherwise run the Pallas kernel."""
    if x.size * x.dtype.itemsize < min_pallas_bytes:
        return reference_forward(x, w1_t, b1, w2_row, b2)
    return attention_pallas(x, w1_t, b1, w2_row, b2, **kw)


def reference_forward(x, w1_t, b1, w2_row, b2):
    """Pure-JAX reference mirroring the PyTorch forward."""
    B, S, D = x.shape
    x2 = x.reshape(-1, D)
    u = jnp.tanh(x2 @ w1_t + b1)
    logits = (u @ w2_row.T + b2).reshape(B, 1, S)
    alpha = jax.nn.softmax(logits, axis=-1)
    return jnp.matmul(alpha, x).reshape(B, D)


if __name__ == "__main__":
    n_hidden = 32
    sen_len = 8
    D = 2 * n_hidden

    key = jax.random.PRNGKey(0)
    kx1, kx2, kx3, kw1, kb1, kw2, kb2 = jax.random.split(key, 7)

    # Parameters (PyTorch nn.Linear stores weight as (out, in)).
    w1_pt = jax.random.normal(kw1, (D, D), dtype=jnp.float32) * 0.1
    b1 = jax.random.normal(kb1, (D,), dtype=jnp.float32) * 0.1
    w2_pt = jax.random.normal(kw2, (1, D), dtype=jnp.float32) * 0.1
    b2 = jax.random.normal(kb2, (1,), dtype=jnp.float32) * 0.1

    # Glue: pre-transpose / reshape so the kernel computes x @ W1_pt.T.
    w1_t = w1_pt.T                      # (D, D)
    b1_k = b1.reshape(1, D)
    w2_row = w2_pt                      # (1, D)
    b2_k = b2                           # (1,) -> SMEM scalar

    cases = [
        # Module-sized input (batch_size * doc_len = 6); single grid step.
        ("small", jax.random.normal(kx1, (6, sen_len, D), dtype=jnp.float32)),
        # Mid-size batch; exercises batch padding to the packed row alignment.
        ("mid", jax.random.normal(kx2, (40, sen_len, D), dtype=jnp.float32)),
        # Larger batch; exercises the multi-step grid (>= 2 balanced steps).
        ("multi-step", jax.random.normal(kx3, (1200, sen_len, D), dtype=jnp.float32)),
    ]

    for name, x in cases:
        out = jax.block_until_ready(
            attention_pallas(x, w1_t, b1_k, w2_row, b2_k))
        ref = reference_forward(x, w1_t, b1_k, w2_row, b2_k)
        assert out.shape == (x.shape[0], D), f"{name}: bad shape {out.shape}"
        assert jnp.allclose(out, ref, atol=1e-5, rtol=1e-5), f"{name} mismatch"

    print("KERNEL_OK")
</pallas_src>

<mosaic_0001>
module attributes {stable_mosaic.version = 11 : i64} {
  func.func @attention_kernel(%arg0: i32, %arg1: memref<128x64xf32, #tpu.memory_space<vmem>>, %arg2: memref<64x64xf32, #tpu.memory_space<vmem>>, %arg3: memref<2x64xf32, #tpu.memory_space<vmem>>, %arg4: memref<1xf32, #tpu.memory_space<smem>>, %arg5: memref<8x128xf32, #tpu.memory_space<vmem>>) attributes {dimension_semantics = [#tpu.dimension_semantics<parallel>], iteration_bounds = array<i64: 1>, scalar_prefetch = 0 : i64, scratch_operands = 0 : i64, tpu.core_type = #tpu.core_type<tc>, window_params = [{transform_indices = @transform_0, window_bounds = array<i64: 128, 64>}, {pipeline_mode = #tpu.pipeline_mode<synchronous>, transform_indices = @transform_1, window_bounds = array<i64: 64, 64>}, {pipeline_mode = #tpu.pipeline_mode<synchronous>, transform_indices = @transform_2, window_bounds = array<i64: 2, 64>}, {transform_indices = @transform_3, window_bounds = array<i64: 1>}, {transform_indices = @transform_4, window_bounds = array<i64: 8, 128>}]} {
    %c0 = arith.constant 0 : index
    %c0_0 = arith.constant 0 : index
    %0 = vector.load %arg1[%c0, %c0_0] : memref<128x64xf32, #tpu.memory_space<vmem>>, vector<128x64xf32>
    %c0_1 = arith.constant 0 : index
    %c0_2 = arith.constant 0 : index
    %1 = vector.load %arg3[%c0_1, %c0_2] : memref<2x64xf32, #tpu.memory_space<vmem>>, vector<1x64xf32>
    %c1 = arith.constant 1 : index
    %c0_3 = arith.constant 0 : index
    %2 = vector.load %arg3[%c1, %c0_3] : memref<2x64xf32, #tpu.memory_space<vmem>>, vector<1x64xf32>
    %c0_4 = arith.constant 0 : index
    %c0_5 = arith.constant 0 : index
    %3 = vector.load %arg2[%c0_4, %c0_5] : memref<64x64xf32, #tpu.memory_space<vmem>>, vector<64x64xf32>
    %cst = arith.constant dense<0.000000e+00> : vector<128x64xf32>
    %4 = tpu.matmul %0, %3, %cst {dimension_numbers = #tpu.dot_dimension_numbers<[1], [0], [0], [1], [0, 0, 1, 1], [], []>} : vector<128x64xf32>, vector<64x64xf32>, vector<128x64xf32> -> vector<128x64xf32>
    %5 = vector.broadcast %1 : vector<1x64xf32> to vector<128x64xf32>
    %6 = arith.addf %4, %5 : vector<128x64xf32>
    %7 = math.tanh %6 : vector<128x64xf32>
    %8 = vector.broadcast %2 : vector<1x64xf32> to vector<128x64xf32>
    %9 = arith.mulf %7, %8 : vector<128x64xf32>
    %cst_6 = arith.constant dense<0.000000e+00> : vector<128xf32>
    %10 = vector.multi_reduction <add>, %9, %cst_6 [1] : vector<128x64xf32> to vector<128xf32>
    %c0_7 = arith.constant 0 : index
    %11 = memref.load %arg4[%c0_7] : memref<1xf32, #tpu.memory_space<smem>>
    %12 = vector.broadcast %11 : f32 to vector<128xf32>
    %13 = arith.addf %10, %12 : vector<128xf32>
    %14 = vector.shape_cast %13 : vector<128xf32> to vector<16x8xf32>
    %cst_8 = arith.constant dense<0xFF800000> : vector<16xf32>
    %15 = vector.multi_reduction <maximumf>, %14, %cst_8 [1] : vector<16x8xf32> to vector<16xf32>
    %16 = vector.shape_cast %15 : vector<16xf32> to vector<16x1xf32>
    %17 = vector.broadcast %16 : vector<16x1xf32> to vector<16x8xf32>
    %18 = arith.subf %14, %17 : vector<16x8xf32>
    %19 = math.exp %18 : vector<16x8xf32>
    %cst_9 = arith.constant dense<0.000000e+00> : vector<16xf32>
    %20 = vector.multi_reduction <add>, %19, %cst_9 [1] : vector<16x8xf32> to vector<16xf32>
    %21 = vector.shape_cast %20 : vector<16xf32> to vector<16x1xf32>
    %22 = tpu.reciprocal %21 {approx = true} : vector<16x1xf32> -> vector<16x1xf32>
    %23 = arith.mulf %21, %22 : vector<16x1xf32>
    %cst_10 = arith.constant 2.000000e+00 : f32
    %24 = vector.broadcast %cst_10 : f32 to vector<16x1xf32>
    %25 = arith.subf %24, %23 : vector<16x1xf32>
    %26 = arith.mulf %22, %25 : vector<16x1xf32>
    %27 = vector.broadcast %26 : vector<16x1xf32> to vector<16x8xf32>
    %28 = arith.mulf %19, %27 : vector<16x8xf32>
    %29 = vector.shape_cast %0 : vector<128x64xf32> to vector<16x8x64xf32>
    %30 = vector.shape_cast %28 : vector<16x8xf32> to vector<16x8x1xf32>
    %31 = vector.broadcast %30 : vector<16x8x1xf32> to vector<16x8x64xf32>
    %32 = arith.mulf %31, %29 : vector<16x8x64xf32>
    %cst_11 = arith.constant dense<0.000000e+00> : vector<16x64xf32>
    %33 = vector.multi_reduction <add>, %32, %cst_11 [1] : vector<16x8x64xf32> to vector<16x64xf32>
    %34 = vector.extract_strided_slice %33 {offsets = [0, 0], sizes = [8, 64], strides = [1, 1]} : vector<16x64xf32> to vector<8x64xf32>
    %35 = vector.extract_strided_slice %33 {offsets = [8, 0], sizes = [8, 64], strides = [1, 1]} : vector<16x64xf32> to vector<8x64xf32>
    %36 = tpu.concatenate %34, %35 in 1 : vector<8x64xf32>, vector<8x64xf32> -> vector<8x128xf32>
    %c0_12 = arith.constant 0 : index
    %c0_13 = arith.constant 0 : index
    %37 = vector.load %arg5[%c0_12, %c0_13] : memref<8x128xf32, #tpu.memory_space<vmem>>, vector<8x128xf32>
    tpu.vector_store %arg5[%c0_12, %c0_13], %36 {strides = array<i32>} : memref<8x128xf32, #tpu.memory_space<vmem>>, vector<8x128xf32>,
    return
  }
  func.func @transform_0(%arg0: i32) -> (i32, i32) {
    %c0_i32 = arith.constant 0 : i32
    %c0_i32_0 = arith.constant 0 : i32
    return %arg0, %c0_i32 : i32, i32
  }
  func.func @transform_1(%arg0: i32) -> (i32, i32) {
    %c0_i32 = arith.constant 0 : i32
    %c0_i32_0 = arith.constant 0 : i32
    %c0_i32_1 = arith.constant 0 : i32
    return %c0_i32, %c0_i32_0 : i32, i32
  }
  func.func @transform_2(%arg0: i32) -> (i32, i32) {
    %c0_i32 = arith.constant 0 : i32
    %c0_i32_0 = arith.constant 0 : i32
    %c0_i32_1 = arith.constant 0 : i32
    return %c0_i32, %c0_i32_0 : i32, i32
  }
  func.func @transform_3(%arg0: i32) -> i32 {
    %c0_i32 = arith.constant 0 : i32
    %c0_i32_0 = arith.constant 0 : i32
    return %c0_i32 : i32
  }
  func.func @transform_4(%arg0: i32) -> (i32, i32) {
    %c0_i32 = arith.constant 0 : i32
    %c0_i32_0 = arith.constant 0 : i32
    return %arg0, %c0_i32 : i32, i32
  }
}

</mosaic_0001>

<bundles_post_ra>
// kernel: tpu_custom_call.1
= control target key start
LH: loop header
LB: loop body
LE: loop exit
PB: predicated region body
PF: predicated region fallthrough
CT: control target
= control target key end

     0   :  { %vm49_vm0 = vcmask 523264   ;;  %s1822_s0 = inlined_call_operand.vmem [shape: f32[128,64], index: 0, kind: input, shape index: {}]   ;;  %s1823_s1 = inlined_call_operand.vmem [shape: f32[64,64], index: 1, kind: input, shape index: {}]   ;;  %s1824_s2 = inlined_call_operand.vmem [shape: f32[2,64], index: 2, kind: input, shape index: {}]   ;;  %s1825_s3 = inlined_call_operand.<no memory space> [shape: f32[1], index: 3, kind: input, shape index: {}]   ;;  %s1826_s4 = inlined_call_operand.hbm [shape: f32[8,128], index: 4, kind: output, shape index: {}]  }
   0x1   :  { %v44_v0 = vld [vmem:[%s1823_s1 + $0x38] sm:$0xff]  ;;  %v43_v1 = vld [vmem:[%s1823_s1 + $0x30] sm:$0xff]  ;;  %v42_v2 = vld [vmem:[%s1823_s1 + $0x28] sm:$0xff] }
   0x2   :  { %1183 = vmatprep.subr.mxu1 %v44_v0  ;;  %1143 = vmatprep.subr.mxu0 %v44_v0  ;;  %v1342_v3 = vld [vmem:[%s1822_s0 + $0x40] sm:$0xff]  ;;  %v40_v5 = vld [vmem:[%s1823_s1 + $0x18] sm:$0xff]  ;;  %v39_v6 = vld [vmem:[%s1823_s1 + $0x10] sm:$0xff] }
   0x3   :  { %1191 = vmatpush3.msra.mxu1 %v44_v0  ;;  %1144 = vmatpush3.msra.mxu0 %v44_v0  ;;  %v41_v4 = vld [vmem:[%s1823_s1 + $0x20] sm:$0xff] }
   0x4   :  { %1184 = vmatprep.subr.mxu1 %v43_v1  ;;  %1171 = vmatprep.mubr.msk.f32.mxu1 %vm49_vm0, %v1342_v3 }
   0x5   :  { %1192 = vmatpush3.msra.mxu1 %v43_v1  ;;  %1145 = vmatprep.subr.mxu0 %v43_v1 }
   0x6   :  { %1185 = vmatprep.subr.mxu1 %v42_v2  ;;  %1146 = vmatpush3.msra.mxu0 %v43_v1 }
   0x7   :  { %1193 = vmatpush3.msra.mxu1 %v42_v2  ;;  %1147 = vmatprep.subr.mxu0 %v42_v2 }
   0x8   :  { %1186 = vmatprep.subr.mxu1 %v41_v4  ;;  %1148 = vmatpush3.msra.mxu0 %v42_v2 }
   0x9   :  { %1194 = vmatpush3.msra.mxu1 %v41_v4  ;;  %1149 = vmatprep.subr.mxu0 %v41_v4 }
   0xa   :  { %10 = vsyncpa [#allocation4], 0  ;;  %1187 = vmatprep.subr.mxu1 %v40_v5  ;;  %1150 = vmatpush3.msra.mxu0 %v41_v4  ;;  %v38_v7 = vld [vmem:[%s1823_s1 + $0x8] sm:$0xff]  ;;  %v37_v8 = vld [vmem:[%s1823_s1] sm:$0xff]  ;;  %vm427_vm1 = vcmask 1041409   ;;  %vm429_vm2 = vcmask 1042434  }
   0xb   :  { %1195 = vmatpush3.msra.mxu1 %v40_v5  ;;  %1151 = vmatprep.subr.mxu0 %v40_v5  ;;  %v1364_v9 = vld [vmem:[%s1822_s0 + $0x48] sm:$0xff]  ;;  %v1369_v10 = vld [vmem:[%s1822_s0 + $0x50] sm:$0xff]  ;;  %v19_v11 = vld [vmem:[%s1822_s0] sm:$0xff]  ;;  %vm431_vm3 = vcmask 1043459   ;;  %vm433_vm4 = vcmask 1044484   ;;  %vm435_vm5 = vcmask 1045509  }
   0xc   :  { %1188 = vmatprep.subr.mxu1 %v39_v6  ;;  %1152 = vmatpush3.msra.mxu0 %v40_v5  ;;  %v20_v12 = vld [vmem:[%s1822_s0 + $0x8] sm:$0xff]  ;;  %v21_v13 = vld [vmem:[%s1822_s0 + $0x10] sm:$0xff]  ;;  %v1387_v14 = vld [vmem:[%s1822_s0 + $0x58] sm:$0xff]  ;;  %vm437_vm6 = vcmask 1046534   ;;  %vm439_vm7 = vcmask 1047559   ;;  %vm450_vm8 = vcmask 64512  }
   0xd   :  { %1196 = vmatpush3.msra.mxu1 %v39_v6  ;;  %1153 = vmatprep.subr.mxu0 %v39_v6  ;;  %v1393_v15 = vld [vmem:[%s1822_s0 + $0x60] sm:$0xff]  ;;  %v22_v16 = vld [vmem:[%s1822_s0 + $0x18] sm:$0xff]  ;;  %v1410_v18 = vld [vmem:[%s1822_s0 + $0x68] sm:$0xff] }
   0xe   :  { %1189 = vmatprep.subr.mxu1 %v38_v7  ;;  %1154 = vmatpush3.msra.mxu0 %v39_v6  ;;  %v23_v17 = vld [vmem:[%s1822_s0 + $0x20] sm:$0xff]  ;;  %v1415_v19 = vld [vmem:[%s1822_s0 + $0x70] sm:$0xff]  ;;  %v24_v20 = vld [vmem:[%s1822_s0 + $0x28] sm:$0xff] }
   0xf   :  { %1197 = vmatpush3.msra.mxu1 %v38_v7  ;;  %1155 = vmatprep.subr.mxu0 %v38_v7  ;;  %v25_v21 = vld [vmem:[%s1822_s0 + $0x30] sm:$0xff]  ;;  %v1432_v22 = vld [vmem:[%s1822_s0 + $0x78] sm:$0xff]  ;;  %v1101_v24 = vld [vmem:[%s1824_s2] ss:$0 sm:$0xff] }
  0x10   :  { %1190 = vmatprep.subr.mxu1 %v37_v8  ;;  %1156 = vmatpush3.msra.mxu0 %v38_v7  ;;  %v26_v23 = vld [vmem:[%s1822_s0 + $0x38] sm:$0xff]  ;;  %v1448_v48 = vld [vmem:[%s1824_s2 + $0x1] ss:$0 sm:$0xff] }
  0x11   :  { %1198 = vmatpush3.msra.mxu1 %v37_v8  ;;  %1157 = vmatprep.subr.mxu0 %v37_v8 }
  0x12   :  { %1172 = vmatmul.mubr.msk.f32.vlgmr.msra.gmra.mxu1 %vm49_vm0, %v1364_v9  ;;  %1158 = vmatpush3.msra.mxu0 %v37_v8 }
  0x13   :  { %1174 = vmatprep.mubr.msk.f32.mxu1 %vm49_vm0, %v1369_v10  ;;  %1159 = vmatprep.mubr.msk.f32.mxu0 %vm49_vm0, %v19_v11 }
  0x14   :  { %1160 = vmatmul.mubr.msk.f32.vlgmr.msra.gmra.mxu0 %vm49_vm0, %v20_v12 }
  0x15   :  { %1162 = vmatprep.mubr.msk.f32.mxu0 %vm49_vm0, %v21_v13 }
  0x16   :  { %1175 = vmatmul.mubr.msk.f32.gmra.mxu1 %vm49_vm0, %v1387_v14 }
  0x17   :  { %1177 = vmatprep.mubr.msk.f32.mxu1 %vm49_vm0, %v1393_v15 }
  0x18   :  { %1163 = vmatmul.mubr.msk.f32.gmra.mxu0 %vm49_vm0, %v22_v16 }
  0x19   :  { %1165 = vmatprep.mubr.msk.f32.mxu0 %vm49_vm0, %v23_v17 }
  0x1a   :  { %1178 = vmatmul.mubr.msk.f32.gmra.mxu1 %vm49_vm0, %v1410_v18 }
  0x1b   :  { %1180 = vmatprep.mubr.msk.f32.mxu1 %vm49_vm0, %v1415_v19 }
  0x1c   :  { %1166 = vmatmul.mubr.msk.f32.gmra.mxu0 %vm49_vm0, %v24_v20 }
  0x1d   :  { %1168 = vmatprep.mubr.msk.f32.mxu0 %vm49_vm0, %v25_v21 }
  0x1e   :  { %1181 = vmatmul.mubr.msk.f32.gmra.mxu1 %vm49_vm0, %v1432_v22 }
  0x20   :  { %1169 = vmatmul.mubr.msk.f32.gmra.mxu0 %vm49_vm0, %v26_v23 }
  0xd2   :  { %v1173_v25 = vpop.f32.mrf.mxu1 }
  0xd3   :  { %v210_v26 = vadd.f32 %v1173_v25, %v1101_v24 }
  0xd4   :  { %v204_v27 = vpop.f32.mrf.mxu1  ;;  %v1161_v28 = vpop.f32.mrf.mxu0 }
  0xd5   :  { %1204 = vtanh.f32 %v210_v26  ;;  %v205_v29 = vadd.f32 %v1101_v24, %v204_v27  ;;  %v170_v44 = vadd.f32 %v1161_v28, %v1101_v24 }
  0xd6   :  { %v1176_v30 = vpop.f32.mrf.mxu1  ;;  %v164_v31 = vpop.f32.mrf.mxu0 }
  0xd7   :  { %1206 = vtanh.f32 %v205_v29  ;;  %v220_v32 = vadd.f32 %v1176_v30, %v1101_v24  ;;  %v165_v40 = vadd.f32 %v1101_v24, %v164_v31 }
  0xd8   :  { %v214_v33 = vpop.f32.mrf.mxu1  ;;  %v1164_v34 = vpop.f32.mrf.mxu0 }
  0xd9   :  { %1208 = vtanh.f32 %v220_v32  ;;  %v215_v35 = vadd.f32 %v1101_v24, %v214_v33  ;;  %v180_v54 = vadd.f32 %v1164_v34, %v1101_v24 }
  0xda   :  { %v1179_v36 = vpop.f32.mrf.mxu1  ;;  %v174_v37 = vpop.f32.mrf.mxu0 }
  0xdb   :  { %1210 = vtanh.f32 %v215_v35  ;;  %v230_v38 = vadd.f32 %v1179_v36, %v1101_v24  ;;  %v175_v50 = vadd.f32 %v1101_v24, %v174_v37 }
  0xdc   :  { %v224_v39 = vpop.f32.mrf.mxu1  ;;  %v1167_v41 = vpop.f32.mrf.mxu0 }
  0xdd   :  { %1212 = vtanh.f32 %v230_v38  ;;  %v225_v42 = vadd.f32 %v1101_v24, %v224_v39  ;;  %v190_v62 = vadd.f32 %v1167_v41, %v1101_v24 }
  0xde   :  { %v1182_v43 = vpop.f32.mrf.mxu1  ;;  %v184_v45 = vpop.f32.mrf.mxu0 }
  0xdf   :  { %1214 = vtanh.f32 %v225_v42  ;;  %v240_v46 = vadd.f32 %v1182_v43, %v1101_v24  ;;  %v185_v56 = vadd.f32 %v1101_v24, %v184_v45 }
  0xe0   :  { %v234_v47 = vpop.f32.mrf.mxu1  ;;  %1216 = vtanh.f32 %v165_v40  ;;  %v1170_v52 = vpop.f32.mrf.mxu0 }
  0xe1   :  { %1218 = vtanh.f32 %v240_v46  ;;  %v235_v49 = vadd.f32 %v1101_v24, %v234_v47  ;;  %v200_v6 = vadd.f32 %v1170_v52, %v1101_v24 }
  0xe2   :  { %v1205_v51 = vpop.eup %1204  ;;  %1220 = vtanh.f32 %v170_v44  ;;  %v194_v60 = vpop.f32.mrf.mxu0 }
  0xe3   :  { %1222 = vtanh.f32 %v235_v49  ;;  %v272_v53 = vmul.f32 %v1205_v51, %v1448_v48  ;;  %v195_v4 = vadd.f32 %v1101_v24, %v194_v60  ;;  %v361_v51 = vlaneseq }
  0xe4   :  { %v1207_v55 = vpop.eup %1206  ;;  %1224 = vtanh.f32 %v175_v50 }
  0xe5   :  { %v306_v57 = vsel %vm49_vm0, %v272_v53, 0.0  ;;  %v271_v58 = vmul.f32 %v1207_v55, %v1448_v48  ;;  %1226 = vtanh.f32 %v180_v54  ;;  %v362_v53 = vand.u32 127, %v361_v51 }
  0xe6   :  { %v1209_v59 = vpop.eup %1208  ;;  %307 = vadd.xlane.f32.xlu0 %v306_v57  ;;  %1228 = vtanh.f32 %v185_v56  ;;  %v1482_v54 = vshrl.u32 %v361_v51, 7  ;;  %v1487_v55 = vstv %s1825_s3  ;;  %s1303_s3 = smov 64  }
  0xe7   :  { %v274_v61 = vmul.f32 %v1209_v59, %v1448_v48  ;;  %v303_v1 = vsel %vm49_vm0, %v271_v58, 0.0  ;;  %1230 = vtanh.f32 %v190_v62 }
  0xe8   :  { %v1211_v63 = vpop.eup %1210  ;;  %1232 = vtanh.f32 %v195_v4  ;;  %v1493_v58 = vsub.s32 %v362_v53, %v1482_v54 }
  0xe9   :  { %v312_v0 = vsel %vm49_vm0, %v274_v61, 0.0  ;;  %v273_v2 = vmul.f32 %v1211_v63, %v1448_v48  ;;  %1234 = vtanh.f32 %v200_v6 }
  0xea   :  { %v1213_v5 = vpop.eup %1212  ;;  %313 = vadd.xlane.f32.xlu1 %v312_v0  ;;  %304 = vadd.xlane.f32.xlu0 %v303_v1 }
  0xeb   :  { %v309_v11 = vsel %vm49_vm0, %v273_v2, 0.0  ;;  %v276_v13 = vmul.f32 %v1213_v5, %v1448_v48 }
  0xec   :  { %v1215_v7 = vpop.eup %1214 }
  0xed   :  { %v1217_v8 = vpop.eup %1216  ;;  %v275_v12 = vmul.f32 %v1215_v7, %v1448_v48  ;;  %v318_v23 = vsel %vm49_vm0, %v276_v13, 0.0 }
  0xee   :  { %v1219_v16 = vpop.eup %1218  ;;  %310 = vadd.xlane.f32.xlu1 %v309_v11  ;;  %v263_v26 = vmul.f32 %v1217_v8, %v1448_v48 }
  0xef   :  { %v1221_v17 = vpop.eup %1220  ;;  %v315_v20 = vsel %vm49_vm0, %v275_v12, 0.0  ;;  %v278_v25 = vmul.f32 %v1219_v16, %v1448_v48 }
  0xf0   :  { %v1223_v21 = vpop.eup %1222  ;;  %316 = vadd.xlane.f32.xlu0 %v315_v20  ;;  %v264_v29 = vmul.f32 %v1221_v17, %v1448_v48  ;;  %v279_v33 = vsel %vm49_vm0, %v263_v26, 0.0 }
  0xf1   :  { %v277_v24 = vmul.f32 %v1223_v21, %v1448_v48  ;;  %v1225_v27 = vpop.eup %1224  ;;  %v324_v32 = vsel %vm49_vm0, %v278_v25, 0.0 }
  0xf2   :  { %319 = vadd.xlane.f32.xlu1 %v318_v23  ;;  %v1227_v30 = vpop.eup %1226  ;;  %v265_v34 = vmul.f32 %v1225_v27, %v1448_v48  ;;  %v282_v35 = vsel %vm49_vm0, %v264_v29, 0.0 }
  0xf3   :  { %v321_v28 = vsel %vm49_vm0, %v277_v24, 0.0  ;;  %v1229_v31 = vpop.eup %1228  ;;  %v266_v36 = vmul.f32 %v1227_v30, %v1448_v48 }
  0xf4   :  { %322 = vadd.xlane.f32.xlu0 %v321_v28  ;;  %v1231_v37 = vpop.eup %1230  ;;  %v285_v38 = vsel %vm49_vm0, %v265_v34, 0.0  ;;  %v267_v39 = vmul.f32 %v1229_v31, %v1448_v48 }
  0xf5   :  { %v1233_v40 = vpop.eup %1232  ;;  %v288_v41 = vsel %vm49_vm0, %v266_v36, 0.0  ;;  %v268_v42 = vmul.f32 %v1231_v37, %v1448_v48 }
  0xf6   :  { %325 = vadd.xlane.f32.xlu1 %v324_v32  ;;  %v1235_v43 = vpop.eup %1234  ;;  %v291_v44 = vsel %vm49_vm0, %v267_v39, 0.0  ;;  %v269_v45 = vmul.f32 %v1233_v40, %v1448_v48 }
  0xf7   :  { %v294_v46 = vsel %vm49_vm0, %v268_v42, 0.0  ;;  %v270_v47 = vmul.f32 %v1235_v43, %v1448_v48 }
  0xf8   :  { %280 = vadd.xlane.f32.xlu0 %v279_v33  ;;  %v297_v49 = vsel %vm49_vm0, %v269_v45, 0.0 }
  0xf9   :  { %v300_v50 = vsel %vm49_vm0, %v270_v47, 0.0 }
  0xfa   :  { %283 = vadd.xlane.f32.xlu1 %v282_v35 }
  0xfc   :  { %286 = vadd.xlane.f32.xlu0 %v285_v38 }
  0xfe   :  { %289 = vadd.xlane.f32.xlu1 %v288_v41 }
 0x100   :  { %292 = vadd.xlane.f32.xlu0 %v291_v44 }
 0x102   :  { %295 = vadd.xlane.f32.xlu1 %v294_v46 }
 0x104   :  { %298 = vadd.xlane.f32.xlu0 %v297_v49 }
 0x106   :  { %301 = vadd.xlane.f32.xlu1 %v300_v50 }
 0x16f   :  { %v308_v52 = vpop.xlane.xlu0 %307 }
 0x170   :  { %v1496_v59 = vadd.f32 %v1487_v55, %v308_v52 }
 0x172   :  { %v402_v0 = vrot.slane %v1496_v59, %v1493_v58 }
 0x173   :  { %v314_v56 = vpop.xlane.xlu1 %313  ;;  %v305_v48 = vpop.xlane.xlu0 %304 }
 0x174   :  { %v1490_v57 = vadd.f32 %v1487_v55, %v305_v48  ;;  %v1499_v60 = vadd.f32 %v1487_v55, %v314_v56 }
 0x176   :  { %v398_v61 = vrot.slane %v1490_v57, %v1493_v58  ;;  %v410_v5 = vrot.slane %v1499_v60, %v1493_v58 }
 0x177   :  { %v311_v62 = vpop.xlane.xlu1 %310 }
 0x178   :  { %v1504_v63 = vadd.f32 %v1487_v55, %v311_v62  ;;  %v441_v6 = vsel %vm427_vm1, %v402_v0, %v398_v61 }
 0x179   :  { %v317_v1 = vpop.xlane.xlu0 %316 }
 0x17a   :  { %v406_v2 = vrot.slane %v1504_v63, %v1493_v58  ;;  %v1511_v4 = vadd.f32 %v1487_v55, %v317_v1 }
 0x17b   :  { %v320_v7 = vpop.xlane.xlu1 %319 }
 0x17c   :  { %v442_v8 = vsel %vm429_vm2, %v406_v2, %v441_v6  ;;  %v414_v11 = vrot.slane %v1511_v4, %v1493_v58  ;;  %v1520_v12 = vadd.f32 %v1487_v55, %v320_v7 }
 0x17d   :  { %v443_v13 = vsel %vm431_vm3, %v410_v5, %v442_v8  ;;  %v323_v16 = vpop.xlane.xlu0 %322  ;;  %v1302_v8 = vmov 0  }
 0x17e   :  { %v444_v17 = vsel %vm433_vm4, %v414_v11, %v443_v13  ;;  %v418_v20 = vrot.slane %v1520_v12, %v1493_v58  ;;  %v1527_v21 = vadd.f32 %v1487_v55, %v323_v16  ;;  %1203 = vset.pattern.permute.xlu1 %v1302_v8  ;;  %1202 = vset.pattern.permute.xlu0 %v1302_v8  ;;  %v1589_v11 = vsub.s32 0, %v1482_v54 }
 0x17f   :  { %v326_v23 = vpop.xlane.xlu1 %325  ;;  %v1595_v13 = vsub.s32 2, %v1482_v54  ;;  %v1598_v16 = vsub.s32 3, %v1482_v54 }
 0x180   :  { %v422_v24 = vrot.slane %v1527_v21, %v1493_v58  ;;  %v1532_v25 = vadd.f32 %v1487_v55, %v326_v23  ;;  %v445_v26 = vsel %vm435_vm5, %v418_v20, %v444_v17 }
 0x181   :  { %v281_v27 = vpop.xlane.xlu0 %280 }
 0x182   :  { %v426_v28 = vrot.slane %v1532_v25, %v1493_v58  ;;  %v1538_v29 = vadd.f32 %v1487_v55, %v281_v27  ;;  %v446_v30 = vsel %vm437_vm6, %v422_v24, %v445_v26 }
 0x183   :  { %v284_v31 = vpop.xlane.xlu1 %283 }
 0x184   :  { %v366_v32 = vrot.slane %v1538_v29, %v1493_v58  ;;  %v1544_v33 = vadd.f32 %v1487_v55, %v284_v31  ;;  %v447_v34 = vsel %vm439_vm7, %v426_v28, %v446_v30  ;;  %v1606_v28 = vsub.s32 4, %v1482_v54 }
 0x185   :  { %v454_v35 = vsel %vm450_vm8, %v447_v34, -inf  ;;  %v287_v36 = vpop.xlane.xlu0 %286 }
 0x186   :  { %v370_v37 = vrot.slane %v1544_v33, %v1493_v58  ;;  %455 = vmax.xlane.f32.xlu0 %v454_v35  ;;  %v1551_v38 = vadd.f32 %v1487_v55, %v287_v36  ;;  %v1611_v35 = vsub.s32 5, %v1482_v54 }
 0x187   :  { %v290_v39 = vpop.xlane.xlu1 %289 }
 0x188   :  { %v428_v40 = vsel %vm427_vm1, %v370_v37, %v366_v32  ;;  %v374_v41 = vrot.slane %v1551_v38, %v1493_v58  ;;  %v1557_v42 = vadd.f32 %v1487_v55, %v290_v39 }
 0x189   :  { %v293_v43 = vpop.xlane.xlu0 %292 }
 0x18a   :  { %v430_v44 = vsel %vm429_vm2, %v374_v41, %v428_v40  ;;  %v378_v45 = vrot.slane %v1557_v42, %v1493_v58  ;;  %v1563_v46 = vadd.f32 %v1487_v55, %v293_v43  ;;  %v1621_v41 = vsub.s32 7, %v1482_v54 }
 0x18b   :  { %v296_v47 = vpop.xlane.xlu1 %295 }
 0x18c   :  { %v432_v49 = vsel %vm431_vm3, %v378_v45, %v430_v44  ;;  %v382_v50 = vrot.slane %v1563_v46, %v1493_v58  ;;  %v1569_v51 = vadd.f32 %v1487_v55, %v296_v47 }
 0x18d   :  { %v299_v52 = vpop.xlane.xlu0 %298 }
 0x18e   :  { %v434_v53 = vsel %vm433_vm4, %v382_v50, %v432_v49  ;;  %v386_v56 = vrot.slane %v1569_v51, %v1493_v58  ;;  %v1575_v48 = vadd.f32 %v1487_v55, %v299_v52 }
 0x18f   :  { %v302_v61 = vpop.xlane.xlu1 %301 }
 0x190   :  { %v390_v62 = vrot.slane %v1575_v48, %v1493_v58  ;;  %v1580_v0 = vadd.f32 %v1487_v55, %v302_v61  ;;  %v436_v1 = vsel %vm435_vm5, %v386_v56, %v434_v53  ;;  %v1592_v55 = vsub.s32 1, %v1482_v54 }
 0x192   :  { %v394_v2 = vrot.slane %v1580_v0, %v1493_v58  ;;  %v438_v5 = vsel %vm437_vm6, %v390_v62, %v436_v1 }
 0x194   :  { %v440_v6 = vsel %vm439_vm7, %v394_v2, %v438_v5 }
 0x195   :  { %v451_v7 = vsel %vm450_vm8, %v440_v6, -inf }
 0x196   :  { %452 = vmax.xlane.f32.xlu1 %v451_v7 }
 0x20f   :  { %v456_v17 = vpop.xlane.xlu0 %455 }
 0x210   :  { %v494_v20 = vrot.slane %v456_v17, %v1589_v11  ;;  %v498_v23 = vrot.slane %v456_v17, %v1592_v55  ;;  %v502_v24 = vrot.slane %v456_v17, %v1595_v13  ;;  %v506_v30 = vrot.slane %v456_v17, %v1598_v16 }
 0x211   :  { %v510_v36 = vrot.slane %v456_v17, %v1606_v28  ;;  %v514_v39 = vrot.slane %v456_v17, %v1611_v35  ;;  %v522_v50 = vrot.slane %v456_v17, %v1621_v41 }
 0x212   :  { %v547_v26 = vsub.f32 %v1490_v57, %v494_v20  ;;  %v548_v27 = vsub.f32 %v1496_v59, %v498_v23  ;;  %v549_v31 = vsub.f32 %v1504_v63, %v502_v24  ;;  %v550_v37 = vsub.f32 %v1499_v60, %v506_v30 }
 0x213   :  { %v1616_v59 = vsub.s32 6, %v1482_v54  ;;  %v551_v40 = vsub.f32 %v1511_v4, %v510_v36  ;;  %v552_v44 = vsub.f32 %v1520_v12, %v514_v39  ;;  %v554_v1 = vsub.f32 %v1532_v25, %v522_v50 }
 0x214   :  { %v571_v32 = vmul.f32 1.442695, %v547_v26  ;;  %v573_v34 = vmul.f32 1.442695, %v548_v27  ;;  %v575_v57 = vmul.f32 1.442695, %v549_v31 }
 0x215   :  { %v577_v63 = vmul.f32 1.442695, %v550_v37  ;;  %v518_v43 = vrot.slane %v456_v17, %v1616_v59  ;;  %v579_v60 = vmul.f32 1.442695, %v551_v40  ;;  %v581_v52 = vmul.f32 1.442695, %v552_v44 }
 0x216   :  { %1236 = vpow2.f32 %v571_v32  ;;  %v585_v7 = vmul.f32 1.442695, %v554_v1 }
 0x217   :  { %1238 = vpow2.f32 %v573_v34  ;;  %v553_v4 = vsub.f32 %v1527_v21, %v518_v43 }
 0x218   :  { %1240 = vpow2.f32 %v575_v57 }
 0x219   :  { %1242 = vpow2.f32 %v577_v63  ;;  %v583_v21 = vmul.f32 1.442695, %v553_v4 }
 0x21a   :  { %1244 = vpow2.f32 %v579_v60 }
 0x21b   :  { %1246 = vpow2.f32 %v581_v52 }
 0x21f   :  { %v453_v45 = vpop.xlane.xlu1 %452 }
 0x220   :  { %v466_v47 = vrot.slane %v453_v45, %v1592_v55  ;;  %v474_v49 = vrot.slane %v453_v45, %v1598_v16  ;;  %v482_v56 = vrot.slane %v453_v45, %v1611_v35  ;;  %v490_v2 = vrot.slane %v453_v45, %v1621_v41 }
 0x221   :  { %v470_v25 = vrot.slane %v453_v45, %v1595_v13  ;;  %v478_v24 = vrot.slane %v453_v45, %v1606_v28 }
 0x222   :  { %v540_v53 = vsub.f32 %v1544_v33, %v466_v47  ;;  %v542_v12 = vsub.f32 %v1557_v42, %v474_v49  ;;  %v462_v33 = vrot.slane %v453_v45, %v1589_v11  ;;  %v544_v5 = vsub.f32 %v1569_v51, %v482_v56 }
 0x223   :  { %v1630_v54 = vpop.eup %1236  ;;  %v546_v17 = vsub.f32 %v1580_v0, %v490_v2  ;;  %v541_v26 = vsub.f32 %v1551_v38, %v470_v25  ;;  %v486_v0 = vrot.slane %v453_v45, %v1616_v59  ;;  %v543_v31 = vsub.f32 %v1563_v46, %v478_v24 }
 0x224   :  { %v1634_v61 = vpop.eup %1238  ;;  %v557_v62 = vmul.f32 1.442695, %v540_v53  ;;  %628 = vperm.xlu0 %1202, %v1630_v54   ;;  %v561_v6 = vmul.f32 1.442695, %v542_v12  ;;  %v539_v8 = vsub.f32 %v1538_v29, %v462_v33  ;;  %v565_v20 = vmul.f32 1.442695, %v544_v5 }
 0x225   :  { %631 = vperm.xlu1 %1203, %v1634_v61   ;;  %v1642_v42 = vpop.eup %1240  ;;  %v569_v27 = vmul.f32 1.442695, %v546_v17  ;;  %v559_v32 = vmul.f32 1.442695, %v541_v26  ;;  %v545_v36 = vsub.f32 %v1575_v48, %v486_v0  ;;  %v563_v37 = vmul.f32 1.442695, %v543_v31 }
 0x226   :  { %1248 = vpow2.f32 %v557_v62  ;;  %v1648_v23 = vpop.eup %1242  ;;  %v555_v51 = vmul.f32 1.442695, %v539_v8 }
 0x227   :  { %1250 = vpow2.f32 %v583_v21  ;;  %v1653_v30 = vpop.eup %1244  ;;  %v567_v39 = vmul.f32 1.442695, %v545_v36 }
 0x228   :  { %1252 = vpow2.f32 %v561_v6  ;;  %v1656_v29 = vpop.eup %1246 }
 0x229   :  { %634 = vperm.xlu1 %1203, %v1642_v42   ;;  %1254 = vpow2.f32 %v585_v7 }
 0x22a   :  { %1256 = vpow2.f32 %v565_v20 }
 0x22b   :  { %1258 = vpow2.f32 %v555_v51 }
 0x22c   :  { %1260 = vpow2.f32 %v569_v27 }
 0x22d   :  { %637 = vperm.xlu1 %1203, %v1648_v23   ;;  %1262 = vpow2.f32 %v559_v32 }
 0x22e   :  { %1264 = vpow2.f32 %v563_v37 }
 0x22f   :  { %1266 = vpow2.f32 %v567_v39 }
 0x231   :  { %640 = vperm.xlu1 %1203, %v1653_v30  }
 0x233   :  { %v1660_v34 = vpop.eup %1248 }
 0x234   :  { %607 = vperm.xlu0 %1202, %v1660_v34   ;;  %v1664_v38 = vpop.eup %1250 }
 0x235   :  { %643 = vperm.xlu1 %1203, %v1656_v29   ;;  %v1667_v57 = vpop.eup %1252 }
 0x236   :  { %v1671_v46 = vpop.eup %1254 }
 0x237   :  { %v1673_v40 = vpop.eup %1256 }
 0x238   :  { %613 = vperm.xlu0 %1202, %v1667_v57   ;;  %v1677_v63 = vpop.eup %1258 }
 0x239   :  { %646 = vperm.xlu1 %1203, %v1664_v38   ;;  %v1679_v48 = vpop.eup %1260 }
 0x23a   :  { %v1683_v43 = vpop.eup %1262 }
 0x23b   :  { %v1686_v44 = vpop.eup %1264 }
 0x23c   :  { %619 = vperm.xlu0 %1202, %v1673_v40   ;;  %v1689_v60 = vpop.eup %1266 }
 0x23d   :  { %649 = vperm.xlu1 %1203, %v1671_v46  }
 0x240   :  { %625 = vperm.xlu0 %1202, %v1679_v48  }
 0x241   :  { %604 = vperm.xlu1 %1203, %v1677_v63  }
 0x245   :  { %610 = vperm.xlu1 %1203, %v1683_v43  }
 0x249   :  { %616 = vperm.xlu1 %1203, %v1686_v44  }
 0x24d   :  { %622 = vperm.xlu1 %1203, %v1689_v60  }
 0x29f   :  { %v629_v4 = vpop.permute.xlu0 %628 }
 0x2a0   :  { %v632_v45 = vpop.permute.xlu1 %631  ;;  %v686_v56 = vrot.slane %v629_v4, %v1493_v58 }
 0x2a1   :  { %v690_v53 = vrot.slane %v632_v45, %v1493_v58 }
 0x2a3   :  { %v722_v33 = vsel %vm427_vm1, %v690_v53, %v686_v56 }
 0x2a4   :  { %v635_v47 = vpop.permute.xlu1 %634 }
 0x2a5   :  { %v694_v12 = vrot.slane %v635_v47, %v1493_v58 }
 0x2a7   :  { %v723_v6 = vsel %vm429_vm2, %v694_v12, %v722_v33 }
 0x2a8   :  { %v638_v49 = vpop.permute.xlu1 %637 }
 0x2a9   :  { %v698_v62 = vrot.slane %v638_v49, %v1493_v58 }
 0x2ab   :  { %v724_v8 = vsel %vm431_vm3, %v698_v62, %v723_v6 }
 0x2ac   :  { %v641_v50 = vpop.permute.xlu1 %640 }
 0x2ad   :  { %v702_v1 = vrot.slane %v641_v50, %v1493_v58 }
 0x2af   :  { %v608_v5 = vpop.permute.xlu0 %607  ;;  %v725_v25 = vsel %vm433_vm4, %v702_v1, %v724_v8 }
 0x2b0   :  { %v644_v52 = vpop.permute.xlu1 %643  ;;  %v658_v36 = vrot.slane %v608_v5, %v1493_v58 }
 0x2b1   :  { %v706_v2 = vrot.slane %v644_v52, %v1493_v58 }
 0x2b3   :  { %v726_v20 = vsel %vm435_vm5, %v706_v2, %v725_v25  ;;  %v614_v26 = vpop.permute.xlu0 %613 }
 0x2b4   :  { %v647_v21 = vpop.permute.xlu1 %646  ;;  %v666_v50 = vrot.slane %v614_v26, %v1493_v58 }
 0x2b5   :  { %v710_v7 = vrot.slane %v647_v21, %v1493_v58 }
 0x2b7   :  { %v727_v24 = vsel %vm437_vm6, %v710_v7, %v726_v20  ;;  %v620_v39 = vpop.permute.xlu0 %619 }
 0x2b8   :  { %v650_v17 = vpop.permute.xlu1 %649  ;;  %v674_v62 = vrot.slane %v620_v39, %v1493_v58 }
 0x2b9   :  { %v714_v51 = vrot.slane %v650_v17, %v1493_v58 }
 0x2bb   :  { %v728_v27 = vsel %vm439_vm7, %v714_v51, %v727_v24  ;;  %v626_v56 = vpop.permute.xlu0 %625 }
 0x2bc   :  { %v605_v0 = vpop.permute.xlu1 %604  ;;  %v734_v31 = vsel %vm450_vm8, %v728_v27, 0.0  ;;  %v682_v33 = vrot.slane %v626_v56, %v1493_v58 }
 0x2bd   :  { %735 = vadd.xlane.f32.xlu1 %v734_v31  ;;  %v654_v32 = vrot.slane %v605_v0, %v1493_v58 }
 0x2bf   :  { %v715_v47 = vsel %vm427_vm1, %v658_v36, %v654_v32 }
 0x2c0   :  { %v611_v37 = vpop.permute.xlu1 %610 }
 0x2c1   :  { %v662_v45 = vrot.slane %v611_v37, %v1493_v58 }
 0x2c3   :  { %v716_v49 = vsel %vm429_vm2, %v662_v45, %v715_v47 }
 0x2c4   :  { %v617_v4 = vpop.permute.xlu1 %616  ;;  %v717_v53 = vsel %vm431_vm3, %v666_v50, %v716_v49 }
 0x2c5   :  { %v670_v52 = vrot.slane %v617_v4, %v1493_v58 }
 0x2c7   :  { %v718_v12 = vsel %vm433_vm4, %v670_v52, %v717_v53 }
 0x2c8   :  { %v623_v1 = vpop.permute.xlu1 %622  ;;  %v719_v2 = vsel %vm435_vm5, %v674_v62, %v718_v12 }
 0x2c9   :  { %v678_v21 = vrot.slane %v623_v1, %v1493_v58 }
 0x2cb   :  { %v720_v5 = vsel %vm437_vm6, %v678_v21, %v719_v2 }
 0x2cc   :  { %v721_v6 = vsel %vm439_vm7, %v682_v33, %v720_v5 }
 0x2cd   :  { %v731_v7 = vsel %vm450_vm8, %v721_v6, 0.0 }
 0x2ce   :  { %732 = vadd.xlane.f32.xlu0 %v731_v7 }
 0x346   :  { %v736_v8 = vpop.xlane.xlu1 %735 }
 0x347   :  { %1268 = vrcp.f32 %v736_v8 }
 0x354   :  { %v1269_v25 = vpop.eup %1268 }
 0x355   :  { %v740_v17 = vmul.f32 %v1269_v25, %v736_v8 }
 0x357   :  { %v742_v20 = vsub.f32 2.0, %v740_v17  ;;  %v733_v51 = vpop.xlane.xlu0 %732 }
 0x358   :  { %1270 = vrcp.f32 %v733_v51 }
 0x359   :  { %v744_v24 = vmul.f32 %v1269_v25, %v742_v20 }
 0x35b   :  { %v786_v26 = vrot.slane %v744_v24, %v1592_v55  ;;  %v782_v58 = vrot.slane %v744_v24, %v1589_v11  ;;  %v790_v31 = vrot.slane %v744_v24, %v1595_v13  ;;  %v794_v32 = vrot.slane %v744_v24, %v1598_v16 }
 0x35c   :  { %v798_v39 = vrot.slane %v744_v24, %v1606_v28  ;;  %v802_v45 = vrot.slane %v744_v24, %v1611_v35  ;;  %v806_v49 = vrot.slane %v744_v24, %v1616_v59  ;;  %v810_v50 = vrot.slane %v744_v24, %v1621_v41 }
 0x35d   :  { %v836_v27 = vmul.f32 %v1634_v61, %v786_v26  ;;  %v835_v0 = vmul.f32 %v1630_v54, %v782_v58  ;;  %v837_v36 = vmul.f32 %v1642_v42, %v790_v31  ;;  %v838_v37 = vmul.f32 %v1648_v23, %v794_v32 }
 0x35e   :  { %v839_v61 = vmul.f32 %v1653_v30, %v798_v39  ;;  %v840_v54 = vmul.f32 %v1656_v29, %v802_v45  ;;  %v841_v23 = vmul.f32 %v1664_v38, %v806_v49  ;;  %v842_v52 = vmul.f32 %v1671_v46, %v810_v50 }
 0x35f   :  { %890 = vperm.xlu1 %1203, %v836_v27   ;;  %885 = vperm.xlu0 %1202, %v835_v0  }
 0x363   :  { %895 = vperm.xlu1 %1203, %v837_v36   ;;  %900 = vperm.xlu0 %1202, %v838_v37  }
 0x365   :  { %v1271_v47 = vpop.eup %1270 }
 0x366   :  { %v739_v4 = vmul.f32 %v1271_v47, %v733_v51 }
 0x367   :  { %905 = vperm.xlu1 %1203, %v839_v61   ;;  %910 = vperm.xlu0 %1202, %v840_v54  }
 0x368   :  { %v741_v42 = vsub.f32 2.0, %v739_v4 }
 0x36a   :  { %v743_v53 = vmul.f32 %v1271_v47, %v741_v42 }
 0x36b   :  { %915 = vperm.xlu1 %1203, %v841_v23   ;;  %920 = vperm.xlu0 %1202, %v842_v52  }
 0x36c   :  { %v754_v56 = vrot.slane %v743_v53, %v1592_v55  ;;  %v750_v30 = vrot.slane %v743_v53, %v1589_v11  ;;  %v762_v62 = vrot.slane %v743_v53, %v1598_v16  ;;  %v758_v1 = vrot.slane %v743_v53, %v1595_v13 }
 0x36d   :  { %v770_v21 = vrot.slane %v743_v53, %v1611_v35  ;;  %v766_v55 = vrot.slane %v743_v53, %v1606_v28  ;;  %v778_v16 = vrot.slane %v743_v53, %v1621_v41  ;;  %v774_v13 = vrot.slane %v743_v53, %v1616_v59 }
 0x36e   :  { %v828_v29 = vmul.f32 %v1660_v34, %v754_v56  ;;  %v827_v12 = vmul.f32 %v1677_v63, %v750_v30  ;;  %v830_v38 = vmul.f32 %v1667_v57, %v762_v62  ;;  %v829_v46 = vmul.f32 %v1683_v43, %v758_v1 }
 0x36f   :  { %v832_v11 = vmul.f32 %v1673_v40, %v770_v21  ;;  %v831_v34 = vmul.f32 %v1686_v44, %v766_v55  ;;  %v834_v57 = vmul.f32 %v1679_v48, %v778_v16  ;;  %v833_v63 = vmul.f32 %v1689_v60, %v774_v13 }
 0x370   :  { %850 = vperm.xlu0 %1202, %v828_v29   ;;  %845 = vperm.xlu1 %1203, %v827_v12  }
 0x374   :  { %860 = vperm.xlu0 %1202, %v830_v38   ;;  %855 = vperm.xlu1 %1203, %v829_v46  }
 0x378   :  { %870 = vperm.xlu0 %1202, %v832_v11   ;;  %865 = vperm.xlu1 %1203, %v831_v34  }
 0x37c   :  { %880 = vperm.xlu0 %1202, %v834_v57   ;;  %875 = vperm.xlu1 %1203, %v833_v63  }
 0x3da   :  { %v891_v35 = vpop.permute.xlu1 %890  ;;  %v886_v28 = vpop.permute.xlu0 %885 }
 0x3db   :  { %v932_v43 = vmul.f32 %v891_v35, %v1364_v9  ;;  %v931_v40 = vmul.f32 %v886_v28, %v1342_v3 }
 0x3dd   :  { %v1002_v44 = vsel %vm49_vm0, %v932_v43, 0.0  ;;  %v995_v41 = vsel %vm49_vm0, %v931_v40, 0.0 }
 0x3de   :  { %v1003_v33 = vrot.slane %v1002_v44, 4  ;;  %v996_v59 = vrot.slane %v995_v41, 4  ;;  %v896_v2 = vpop.permute.xlu1 %895  ;;  %v901_v5 = vpop.permute.xlu0 %900 }
 0x3df   :  { %v933_v48 = vmul.f32 %v896_v2, %v1369_v10  ;;  %v934_v60 = vmul.f32 %v901_v5, %v1387_v14 }
 0x3e0   :  { %v1004_v8 = vadd.f32 %v1003_v33, %v1002_v44  ;;  %v997_v9 = vadd.f32 %v996_v59, %v995_v41 }
 0x3e1   :  { %v1009_v6 = vsel %vm49_vm0, %v933_v48, 0.0  ;;  %v1016_v7 = vsel %vm49_vm0, %v934_v60, 0.0 }
 0x3e2   :  { %v1010_v25 = vrot.slane %v1009_v6, 4  ;;  %v1017_v3 = vrot.slane %v1016_v7, 4  ;;  %v906_v17 = vpop.permute.xlu1 %905  ;;  %v911_v20 = vpop.permute.xlu0 %910  ;;  %v1005_v14 = vrot.slane %v1004_v8, 2  ;;  %v998_v27 = vrot.slane %v997_v9, 2 }
 0x3e3   :  { %v935_v51 = vmul.f32 %v906_v17, %v1393_v15  ;;  %v936_v24 = vmul.f32 %v911_v20, %v1410_v18  ;;  %v1272_v20 = vld [vmem:[%s1822_s0] sm:$0xff] }
 0x3e4   :  { %v1011_v26 = vadd.f32 %v1010_v25, %v1009_v6  ;;  %v1018_v0 = vadd.f32 %v1017_v3, %v1016_v7  ;;  %v1006_v50 = vadd.f32 %v1005_v14, %v1004_v8  ;;  %v999_v4 = vadd.f32 %v998_v27, %v997_v9 }
 0x3e5   :  { %v1023_v58 = vsel %vm49_vm0, %v935_v51, 0.0  ;;  %v1030_v10 = vsel %vm49_vm0, %v936_v24, 0.0  ;;  %v1273_v24 = vld [vmem:[%s1822_s0 + $0x8] sm:$0xff] }
 0x3e6   :  { %v916_v31 = vpop.permute.xlu1 %915  ;;  %v921_v32 = vpop.permute.xlu0 %920  ;;  %v1024_v36 = vrot.slane %v1023_v58, 4  ;;  %v1031_v37 = vrot.slane %v1030_v10, 4  ;;  %v1012_v47 = vrot.slane %v1011_v26, 2  ;;  %v1019_v42 = vrot.slane %v1018_v0, 2 }
 0x3e7   :  { %v937_v39 = vmul.f32 %v916_v31, %v1415_v19  ;;  %v938_v45 = vmul.f32 %v921_v32, %v1432_v22  ;;  %v1007_v19 = vrot.slane %v1006_v50, 1  ;;  %v1000_v12 = vrot.slane %v999_v4, 1  ;;  %v1275_v32 = vld [vmem:[%s1822_s0 + $0x18] sm:$0xff] }
 0x3e8   :  { %v1025_v15 = vadd.f32 %v1024_v36, %v1023_v58  ;;  %v1032_v54 = vadd.f32 %v1031_v37, %v1030_v10  ;;  %v1013_v52 = vadd.f32 %v1012_v47, %v1011_v26  ;;  %v1020_v22 = vadd.f32 %v1019_v42, %v1018_v0  ;;  %v1274_v10 = vld [vmem:[%s1822_s0 + $0x10] sm:$0xff] }
 0x3e9   :  { %v1037_v18 = vsel %vm49_vm0, %v937_v39, 0.0  ;;  %v1044_v61 = vsel %vm49_vm0, %v938_v45, 0.0  ;;  %v1008_v55 = vadd.f32 %v1007_v19, %v1006_v50  ;;  %v1001_v11 = vadd.f32 %v1000_v12, %v999_v4  ;;  %v1276_v39 = vld [vmem:[%s1822_s0 + $0x20] sm:$0xff]  ;;  %v1278_v42 = vld [vmem:[%s1822_s0 + $0x30] sm:$0xff] }
 0x3ea   :  { %v1038_v49 = vrot.slane %v1037_v18, 4  ;;  %v1045_v23 = vrot.slane %v1044_v61, 4  ;;  %v1026_v53 = vrot.slane %v1025_v15, 2  ;;  %v1033_v29 = vrot.slane %v1032_v54, 2 }
 0x3eb   :  { %v1014_v1 = vrot.slane %v1013_v52, 1  ;;  %v1021_v34 = vrot.slane %v1020_v22, 1  ;;  %v1075_v28 = vsel %vm427_vm1, %v1008_v55, %v1001_v11  ;;  %v846_v9 = vpop.permute.xlu1 %845  ;;  %v851_v25 = vpop.permute.xlu0 %850 }
 0x3ec   :  { %v1039_v56 = vadd.f32 %v1038_v49, %v1037_v18  ;;  %v1046_v30 = vadd.f32 %v1045_v23, %v1044_v61  ;;  %v1027_v38 = vadd.f32 %v1026_v53, %v1025_v15  ;;  %v1034_v21 = vadd.f32 %v1033_v29, %v1032_v54  ;;  %v1277_v49 = vld [vmem:[%s1822_s0 + $0x28] sm:$0xff] }
 0x3ed   :  { %v1015_v13 = vadd.f32 %v1014_v1, %v1013_v52  ;;  %v1022_v43 = vadd.f32 %v1021_v34, %v1020_v22  ;;  %v923_v51 = vmul.f32 %v1272_v20, %v846_v9  ;;  %v924_v26 = vmul.f32 %v1273_v24, %v851_v25  ;;  %v1279_v22 = vld [vmem:[%s1822_s0 + $0x38] sm:$0xff]  ;;  %s1304_s0 = smov [#allocation3]  }
 0x3ee   :  { %v1040_v62 = vrot.slane %v1039_v56, 2  ;;  %v1047_v46 = vrot.slane %v1046_v30, 2  ;;  %v1028_v57 = vrot.slane %v1027_v38, 1  ;;  %v1035_v35 = vrot.slane %v1034_v21, 1  ;;  %s1093_s30 = sshll.u32 %s1304_s0, 4  ;;  %s1094_s30 = int_to_ptr.vmem [resolvable:$true] %s1093_s30 }
 0x3ef   :  { %v1076_v44 = vsel %vm429_vm2, %v1015_v13, %v1075_v28  ;;  %v856_v3 = vpop.permute.xlu1 %855  ;;  %v861_v17 = vpop.permute.xlu0 %860  ;;  %v939_v27 = vsel %vm49_vm0, %v923_v51, 0.0  ;;  %v946_v31 = vsel %vm49_vm0, %v924_v26, 0.0  ;;  %s1280_s5 = scalar_lea.vmem %s1094_s30, 128  ;;  %p1285_p1 = scmp.lt.s32.totalorder %s1094_s30, %s1094_s30 }
 0x3f0   :  { %v1041_v16 = vadd.f32 %v1040_v62, %v1039_v56  ;;  %v1048_v63 = vadd.f32 %v1047_v46, %v1046_v30  ;;  %v1029_v41 = vadd.f32 %v1028_v57, %v1027_v38  ;;  %v1036_v59 = vadd.f32 %v1035_v35, %v1034_v21  ;;  %p1281_p0 = scmp.ne.s32.totalorder %s1094_s30, %s1280_s5  ;;  %p1286_p2 = scmp.lt.s32.totalorder %s1280_s5, %s1280_s5 }
 0x3f1   :  { %v1077_v5 = vsel %vm431_vm3, %v1022_v43, %v1076_v44  ;;  %v925_v14 = vmul.f32 %v1274_v10, %v856_v3  ;;  %v926_v36 = vmul.f32 %v1275_v32, %v861_v17  ;;  %v940_v47 = vrot.slane %v939_v27, 4 }
 0x3f2   :  { %v1042_v40 = vrot.slane %v1041_v16, 1  ;;  %v1049_v33 = vrot.slane %v1048_v63, 1  ;;  %v1078_v60 = vsel %vm433_vm4, %v1029_v41, %v1077_v5  ;;  %v947_v18 = vrot.slane %v946_v31, 4  ;;  %p1287_p3 = por %p1286_p2, %p1285_p1 }
 0x3f3   :  { %v1079_v6 = vsel %vm435_vm5, %v1036_v59, %v1078_v60  ;;  %v866_v58 = vpop.permute.xlu1 %865  ;;  %v871_v0 = vpop.permute.xlu0 %870  ;;  %v953_v37 = vsel %vm49_vm0, %v925_v14, 0.0  ;;  %v960_v54 = vsel %vm49_vm0, %v926_v36, 0.0  ;;  %v941_v53 = vadd.f32 %v940_v47, %v939_v27 }
 0x3f4   :  { %v1043_v2 = vadd.f32 %v1042_v40, %v1041_v16  ;;  %v1050_v48 = vadd.f32 %v1049_v33, %v1048_v63  ;;  %v927_v45 = vmul.f32 %v1276_v39, %v866_v58  ;;  %v954_v61 = vrot.slane %v953_v37, 4  ;;  %p1288_p4 = pnand %p1287_p3, %p1281_p0 }
 0x3f5   :  { %v928_v50 = vmul.f32 %v1277_v49, %v871_v0  ;;  %v948_v56 = vadd.f32 %v947_v18, %v946_v31  ;;  %v961_v30 = vrot.slane %v960_v54, 4  ;;  %v942_v38 = vrot.slane %v941_v53, 2 }
 0x3f6   :  { %v1080_v7 = vsel %vm437_vm6, %v1043_v2, %v1079_v6  ;;  %v967_v4 = vsel %vm49_vm0, %v927_v45, 0.0  ;;  %v955_v29 = vadd.f32 %v954_v61, %v953_v37 }
 0x3f7   :  { %v1081_v8 = vsel %vm439_vm7, %v1050_v48, %v1080_v7  ;;  %v876_v15 = vpop.permute.xlu1 %875  ;;  %v881_v52 = vpop.permute.xlu0 %880  ;;  %v968_v19 = vrot.slane %v967_v4, 4  ;;  %v974_v12 = vsel %vm49_vm0, %v928_v50, 0.0  ;;  %v949_v46 = vrot.slane %v948_v56, 2 }
 0x3f8   :  { %1082 = vrot.lane.b32.xlu1 %v1081_v8, %s1303_s3  ;;  %v929_v23 = vmul.f32 %v1278_v42, %v876_v15  ;;  %v930_v62 = vmul.f32 %v1279_v22, %v881_v52  ;;  %v962_v21 = vadd.f32 %v961_v30, %v960_v54  ;;  %v975_v55 = vrot.slane %v974_v12, 4 }
 0x3f9   :  { %v956_v11 = vrot.slane %v955_v29, 2  ;;  %v969_v34 = vadd.f32 %v968_v19, %v967_v4  ;;  %v943_v57 = vadd.f32 %v942_v38, %v941_v53  ;;  %v950_v63 = vadd.f32 %v949_v46, %v948_v56 }
 0x3fa   :  { %v981_v1 = vsel %vm49_vm0, %v929_v23, 0.0  ;;  %v988_v13 = vsel %vm49_vm0, %v930_v62, 0.0  ;;  %v963_v35 = vrot.slane %v962_v21, 2  ;;  %v976_v28 = vadd.f32 %v975_v55, %v974_v12 }
 0x3fb   :  { %v982_v16 = vrot.slane %v981_v1, 4  ;;  %v989_v43 = vrot.slane %v988_v13, 4  ;;  %v957_v40 = vadd.f32 %v956_v11, %v955_v29  ;;  %v970_v44 = vrot.slane %v969_v34, 2 }
 0x3fc   :  { %v944_v33 = vrot.slane %v943_v57, 1  ;;  %v951_v59 = vrot.slane %v950_v63, 1  ;;  %v964_v2 = vadd.f32 %v963_v35, %v962_v21  ;;  %v977_v5 = vrot.slane %v976_v28, 2 }
 0x3fd   :  { %v983_v41 = vadd.f32 %v982_v16, %v981_v1  ;;  %v990_v48 = vadd.f32 %v989_v43, %v988_v13  ;;  %v958_v60 = vrot.slane %v957_v40, 1  ;;  %v971_v6 = vadd.f32 %v970_v44, %v969_v34 }
 0x3fe   :  { %v945_v8 = vadd.f32 %v944_v33, %v943_v57  ;;  %v952_v9 = vadd.f32 %v951_v59, %v950_v63  ;;  %v965_v25 = vrot.slane %v964_v2, 1  ;;  %v978_v3 = vadd.f32 %v977_v5, %v976_v28 }
 0x3ff   :  { %v984_v7 = vrot.slane %v983_v41, 2  ;;  %v991_v17 = vrot.slane %v990_v48, 2  ;;  %v959_v20 = vadd.f32 %v958_v60, %v957_v40  ;;  %v972_v51 = vrot.slane %v971_v6, 1 }
 0x400   :  { %v1059_v26 = vsel %vm427_vm1, %v952_v9, %v945_v8  ;;  %v966_v58 = vadd.f32 %v965_v25, %v964_v2  ;;  %v979_v10 = vrot.slane %v978_v3, 1 }
 0x401   :  { %v985_v24 = vadd.f32 %v984_v7, %v983_v41  ;;  %v992_v14 = vadd.f32 %v991_v17, %v990_v48  ;;  %v1060_v27 = vsel %vm429_vm2, %v959_v20, %v1059_v26  ;;  %v973_v0 = vadd.f32 %v972_v51, %v971_v6 }
 0x402   :  { %v1061_v32 = vsel %vm431_vm3, %v966_v58, %v1060_v27  ;;  %v980_v36 = vadd.f32 %v979_v10, %v978_v3 }
 0x403   :  { %v986_v31 = vrot.slane %v985_v24, 1  ;;  %v993_v37 = vrot.slane %v992_v14, 1  ;;  %v1062_v45 = vsel %vm433_vm4, %v973_v0, %v1061_v32 }
 0x404   :  { %v1063_v15 = vsel %vm435_vm5, %v980_v36, %v1062_v45 }
 0x405   :  { %v987_v39 = vadd.f32 %v986_v31, %v985_v24  ;;  %v994_v47 = vadd.f32 %v993_v37, %v992_v14 }
 0x407   :  { %v1064_v18 = vsel %vm437_vm6, %v987_v39, %v1063_v15 }
 0x408   :  { %v1065_v54 = vsel %vm439_vm7, %v994_v47, %v1064_v18 }
 0x46a   :  { %v1083_v61 = vpop.permute.xlu1 %1082 }
 0x46b   :  { %v1085_v49 = vsel %vm49_vm0, %v1065_v54, %v1083_v61 }
 0x46c   :  { %1086 = vst [vmem:[#allocation3] sm:$0xff] %v1085_v49 }
 0x46d   :  { %1291 = shalt.err (!%p1288_p4)
}
 0x46e   :  { %1096 = dma.vmem_to_hbm [thread:$0]  %s1094_s30, 128, %s1826_s4, [#allocation4]  }
 0x46f   :  { %1300 = dma.done.wait [#allocation4], 128  }
 0x470   :  { %1301 = vsyncadd [#allocation4], 4294967168 }
 0x471   :  { %1100 = vsyncpa [#allocation4], 1 }

</bundles_post_ra>
